<compile_context>
chip_gen: v6e
topology: v6e:2x2x1
jax: 0.10.0
libtpu: 0.0.40
codegen_flags: <defaults>
</compile_context>

<pallas_src>
import math

import jax
import jax.numpy as jnp
from jax.experimental import pallas as pl
from jax.experimental.pallas import tpu as pltpu

LANE = 128  # TPU vreg lane width


# ----------------------------------------------------------------------------
# Kernel
# ----------------------------------------------------------------------------
def _mat_gru_cell_kernel(q_ref, w_ref, uh_ref, b_ref, out_ref):
    """Fused mat_GRU_cell forward.

    q_ref  : (rows, cols_pad)            prev_Q (lane-padded)
    w_ref  : (3*rows, rows)              [[Wz+Uz]; [Wr+Ur]; [Wh]]
    uh_ref : (rows, rows)                Uh
    b_ref  : (3*rows, cols_pad)          [[bz]; [br]; [bh]] (lane-padded)
    out_ref: (rows, cols_pad)            new_Q (lane-padded)
    """
    q = q_ref[...]
    rows = q.shape[0]

    # Single stacked MXU pass for all three gates' "W-side" contributions.
    gates = jnp.dot(w_ref[...], q, preferred_element_type=jnp.float32) + b_ref[...]

    z = jax.nn.sigmoid(gates[:rows, :])                 # update gate
    r = jax.nn.sigmoid(gates[rows:2 * rows, :])         # reset gate

    # Candidate hidden state: second (dependent) matmul only.
    h_cap = jnp.tanh(
        gates[2 * rows:, :]
        + jnp.dot(uh_ref[...], r * q, preferred_element_type=jnp.float32))

    out_ref[...] = ((1.0 - z) * q + z * h_cap).astype(out_ref.dtype)


# ----------------------------------------------------------------------------
# Parameter handling
# ----------------------------------------------------------------------------
def init_params(key, rows, cols):
    """Mirror mat_GRU_gate.__init__: W,U ~ U(-1/sqrt(rows), 1/sqrt(rows)),
    shape (rows, rows); bias = zeros(rows, cols)."""
    stdv = 1.0 / math.sqrt(rows)
    keys = jax.random.split(key, 6)
    params = {}
    for name, (kw, ku) in zip(("z", "r", "h"),
                              [(keys[0], keys[1]),
                               (keys[2], keys[3]),
                               (keys[4], keys[5])]):
        params[f"W{name}"] = jax.random.uniform(
            kw, (rows, rows), jnp.float32, minval=-stdv, maxval=stdv)
        params[f"U{name}"] = jax.random.uniform(
            ku, (rows, rows), jnp.float32, minval=-stdv, maxval=stdv)
        params[f"b{name}"] = jnp.zeros((rows, cols), jnp.float32)
    return params


def fuse_params(params):
    """Pre-add W+U for the z/r gates (both see the same Q) and stack the three
    gate weights / biases so the kernel does one big matmul."""
    W = jnp.concatenate([params["Wz"] + params["Uz"],
                         params["Wr"] + params["Ur"],
                         params["Wh"]], axis=0)                       # (3*rows, rows)
    B = jnp.concatenate([params["bz"], params["br"], params["bh"]],
                        axis=0)                                       # (3*rows, cols)
    return {"W": W, "Uh": params["Uh"], "B": B}


def _pad_lanes(x, cols_pad):
    pad = cols_pad - x.shape[-1]
    if pad == 0:
        return x
    widths = [(0, 0)] * (x.ndim - 1) + [(0, pad)]
    return jnp.pad(x, widths)


# ----------------------------------------------------------------------------
# Wrappers
# ----------------------------------------------------------------------------
@jax.jit
def mat_gru_cell(prev_Q, fused):
    """Single cell: grid-less pallas_call, every operand resident in VMEM."""
    rows, cols = prev_Q.shape
    cols_pad = pl.cdiv(cols, LANE) * LANE

    q_p = _pad_lanes(prev_Q, cols_pad)
    b_p = _pad_lanes(fused["B"], cols_pad)

    vmem = pl.BlockSpec(memory_space=pltpu.MemorySpace.VMEM)
    out = pl.pallas_call(
        _mat_gru_cell_kernel,
        out_shape=jax.ShapeDtypeStruct((rows, cols_pad), prev_Q.dtype),
        in_specs=[vmem, vmem, vmem, vmem],
        out_specs=vmem,
    )(q_p, fused["W"], fused["Uh"], b_p)
    return out[:, :cols]


@jax.jit
def mat_gru_cell_batched(prev_Qs, fused):
    """Many independent cells sharing weights: one pallas_call, batch axis is a
    'parallel' grid dimension (megacore-shardable on v7x)."""
    batch, rows, cols = prev_Qs.shape
    cols_pad = pl.cdiv(cols, LANE) * LANE

    q_p = _pad_lanes(prev_Qs, cols_pad)
    b_p = _pad_lanes(fused["B"], cols_pad)

    q_spec = pl.BlockSpec((None, rows, cols_pad), lambda b: (b, 0, 0))  # squeezed batch dim
    w_spec = pl.BlockSpec((3 * rows, rows), lambda b: (0, 0))
    u_spec = pl.BlockSpec((rows, rows), lambda b: (0, 0))
    b_spec = pl.BlockSpec((3 * rows, cols_pad), lambda b: (0, 0))

    out = pl.pallas_call(
        _mat_gru_cell_kernel,
        out_shape=jax.ShapeDtypeStruct((batch, rows, cols_pad), prev_Qs.dtype),
        grid=(batch,),
        in_specs=[q_spec, w_spec, u_spec, b_spec],
        out_specs=q_spec,
        compiler_params=pltpu.CompilerParams(
            dimension_semantics=("parallel",)),
    )(q_p, fused["W"], fused["Uh"], b_p)
    return out[:, :, :cols]


# ----------------------------------------------------------------------------
# Reference + test
# ----------------------------------------------------------------------------
def _reference(prev_Q, p):
    q = prev_Q
    z = jax.nn.sigmoid(p["Wz"] @ q + p["Uz"] @ q + p["bz"])
    r = jax.nn.sigmoid(p["Wr"] @ q + p["Ur"] @ q + p["br"])
    h_cap = jnp.tanh(p["Wh"] @ q + p["Uh"] @ (r * q) + p["bh"])
    return (1.0 - z) * q + z * h_cap


if __name__ == "__main__":
    rows, cols = 64, 32        # in_feature (rows), out_feature (cols)
    batch = 4                  # independent cells sharing weights

    key = jax.random.PRNGKey(0)
    k_param, k_q, k_qb = jax.random.split(key, 3)

    params = init_params(k_param, rows, cols)
    fused = fuse_params(params)

    # --- single cell ---
    prev_Q = jax.random.normal(k_q, (rows, cols), jnp.float32)
    new_Q = jax.block_until_ready(mat_gru_cell(prev_Q, fused))
    ref = _reference(prev_Q, params)
    assert new_Q.shape == (rows, cols)
    assert jnp.allclose(new_Q, ref, atol=1e-5, rtol=1e-5), "single-cell mismatch"

    # --- batched cells ---
    prev_Qs = jax.random.normal(k_qb, (batch, rows, cols), jnp.float32)
    new_Qs = jax.block_until_ready(mat_gru_cell_batched(prev_Qs, fused))
    ref_b = jax.vmap(lambda q: _reference(q, params))(prev_Qs)
    assert new_Qs.shape == (batch, rows, cols)
    assert jnp.allclose(new_Qs, ref_b, atol=1e-5, rtol=1e-5), "batched mismatch"

    print("KERNEL_OK")
</pallas_src>

<mosaic_0001>
module attributes {stable_mosaic.version = 11 : i64} {
  func.func @_mat_gru_cell_kernel(%arg0: memref<64x128xf32, #tpu.memory_space<vmem>>, %arg1: memref<192x64xf32, #tpu.memory_space<vmem>>, %arg2: memref<64x64xf32, #tpu.memory_space<vmem>>, %arg3: memref<192x128xf32, #tpu.memory_space<vmem>>, %arg4: memref<64x128xf32, #tpu.memory_space<vmem>>) attributes {dimension_semantics = [], scalar_prefetch = 0 : i64, scratch_operands = 0 : i64, tpu.core_type = #tpu.core_type<tc>} {
    %c0 = arith.constant 0 : index
    %c0_0 = arith.constant 0 : index
    %0 = vector.load %arg0[%c0, %c0_0] : memref<64x128xf32, #tpu.memory_space<vmem>>, vector<64x128xf32>
    %c0_1 = arith.constant 0 : index
    %c0_2 = arith.constant 0 : index
    %1 = vector.load %arg1[%c0_1, %c0_2] : memref<192x64xf32, #tpu.memory_space<vmem>>, vector<192x64xf32>
    %cst = arith.constant dense<0.000000e+00> : vector<192x128xf32>
    %2 = tpu.matmul %1, %0, %cst {dimension_numbers = #tpu.dot_dimension_numbers<[1], [0], [0], [1], [0, 0, 1, 1], [], []>} : vector<192x64xf32>, vector<64x128xf32>, vector<192x128xf32> -> vector<192x128xf32>
    %c0_3 = arith.constant 0 : index
    %c0_4 = arith.constant 0 : index
    %3 = vector.load %arg3[%c0_3, %c0_4] : memref<192x128xf32, #tpu.memory_space<vmem>>, vector<192x128xf32>
    %4 = arith.addf %2, %3 : vector<192x128xf32>
    %5 = vector.extract_strided_slice %4 {offsets = [0, 0], sizes = [64, 128], strides = [1, 1]} : vector<192x128xf32> to vector<64x128xf32>
    %6 = arith.negf %5 : vector<64x128xf32>
    %7 = math.exp %6 : vector<64x128xf32>
    %cst_5 = arith.constant 1.000000e+00 : f32
    %8 = vector.broadcast %cst_5 : f32 to vector<64x128xf32>
    %9 = arith.addf %8, %7 : vector<64x128xf32>
    %10 = arith.divf %8, %9 : vector<64x128xf32>
    %11 = vector.extract_strided_slice %4 {offsets = [64, 0], sizes = [64, 128], strides = [1, 1]} : vector<192x128xf32> to vector<64x128xf32>
    %12 = arith.negf %11 : vector<64x128xf32>
    %13 = math.exp %12 : vector<64x128xf32>
    %cst_6 = arith.constant 1.000000e+00 : f32
    %14 = vector.broadcast %cst_6 : f32 to vector<64x128xf32>
    %15 = arith.addf %14, %13 : vector<64x128xf32>
    %16 = arith.divf %14, %15 : vector<64x128xf32>
    %17 = vector.extract_strided_slice %4 {offsets = [128, 0], sizes = [64, 128], strides = [1, 1]} : vector<192x128xf32> to vector<64x128xf32>
    %c0_7 = arith.constant 0 : index
    %c0_8 = arith.constant 0 : index
    %18 = vector.load %arg2[%c0_7, %c0_8] : memref<64x64xf32, #tpu.memory_space<vmem>>, vector<64x64xf32>
    %19 = arith.mulf %16, %0 : vector<64x128xf32>
    %cst_9 = arith.constant dense<0.000000e+00> : vector<64x128xf32>
    %20 = tpu.matmul %18, %19, %cst_9 {dimension_numbers = #tpu.dot_dimension_numbers<[1], [0], [0], [1], [0, 0, 1, 1], [], []>} : vector<64x64xf32>, vector<64x128xf32>, vector<64x128xf32> -> vector<64x128xf32>
    %21 = arith.addf %17, %20 : vector<64x128xf32>
    %22 = math.tanh %21 : vector<64x128xf32>
    %cst_10 = arith.constant 1.000000e+00 : f32
    %23 = vector.broadcast %cst_10 : f32 to vector<64x128xf32>
    %24 = arith.subf %23, %10 : vector<64x128xf32>
    %25 = arith.mulf %24, %0 : vector<64x128xf32>
    %26 = arith.mulf %10, %22 : vector<64x128xf32>
    %27 = arith.addf %25, %26 : vector<64x128xf32>
    %c0_11 = arith.constant 0 : index
    %c0_12 = arith.constant 0 : index
    %28 = vector.load %arg4[%c0_11, %c0_12] : memref<64x128xf32, #tpu.memory_space<vmem>>, vector<64x128xf32>
    tpu.vector_store %arg4[%c0_11, %c0_12], %27 {strides = array<i32>} : memref<64x128xf32, #tpu.memory_space<vmem>>, vector<64x128xf32>,
    return
  }
}

</mosaic_0001>

<bundles_post_ra>
// kernel: mat_gru_cell.1
= control target key start
LH: loop header
LB: loop body
LE: loop exit
PB: predicated region body
PF: predicated region fallthrough
CT: control target
= control target key end

     0   :  { %vm73_vm0 = vcmask 523264   ;;  %s1265_s0 = inlined_call_operand.vmem [shape: f32[64,128], index: 0, kind: input, shape index: {}]   ;;  %s1266_s1 = inlined_call_operand.vmem [shape: f32[192,64], index: 1, kind: input, shape index: {}]   ;;  %s1267_s2 = inlined_call_operand.vmem [shape: f32[64,64], index: 2, kind: input, shape index: {}]   ;;  %s1268_s3 = inlined_call_operand.vmem [shape: f32[192,128], index: 3, kind: input, shape index: {}]   ;;  %s1269_s4 = inlined_call_operand.vmem [shape: f32[64,128], index: 4, kind: output, shape index: {}]  }
   0x1   :  { %v932_v0 = vld [vmem:[%s1265_s0 + $0x38] sm:$0xff]  ;;  %v937_v1 = vld [vmem:[%s1265_s0 + $0x30] sm:$0xff]  ;;  %v945_v2 = vld [vmem:[%s1265_s0 + $0x28] sm:$0xff] }
   0x2   :  { %728 = vmatprep.subr.mxu0 %v932_v0  ;;  %808 = vmatprep.subr.mxu1 %v932_v0  ;;  %v25_v3 = vld [vmem:[%s1266_s1] sm:$0xff]  ;;  %v966_v5 = vld [vmem:[%s1265_s0 + $0x18] sm:$0xff]  ;;  %v975_v6 = vld [vmem:[%s1265_s0 + $0x10] sm:$0xff] }
   0x3   :  { %729 = vmatpush3.msra.mxu0 %v932_v0  ;;  %816 = vmatpush3.msra.mxu1 %v932_v0  ;;  %v957_v4 = vld [vmem:[%s1265_s0 + $0x20] sm:$0xff]  ;;  %v984_v7 = vld [vmem:[%s1265_s0 + $0x8] sm:$0xff]  ;;  %v27_v10 = vld [vmem:[%s1266_s1 + $0x10] sm:$0xff] }
   0x4   :  { %730 = vmatprep.subr.mxu0 %v937_v1  ;;  %744 = vmatprep.mubr.msk.f32.mxu0 %vm73_vm0, %v25_v3  ;;  %v993_v8 = vld [vmem:[%s1265_s0] sm:$0xff]  ;;  %v26_v9 = vld [vmem:[%s1266_s1 + $0x8] sm:$0xff]  ;;  %v28_v11 = vld [vmem:[%s1266_s1 + $0x18] sm:$0xff] }
   0x5   :  { %731 = vmatpush3.msra.mxu0 %v937_v1  ;;  %809 = vmatprep.subr.mxu1 %v937_v1  ;;  %v29_v12 = vld [vmem:[%s1266_s1 + $0x20] sm:$0xff]  ;;  %v30_v13 = vld [vmem:[%s1266_s1 + $0x28] sm:$0xff]  ;;  %v31_v14 = vld [vmem:[%s1266_s1 + $0x30] sm:$0xff] }
   0x6   :  { %732 = vmatprep.subr.mxu0 %v945_v2  ;;  %817 = vmatpush3.msra.mxu1 %v937_v1  ;;  %v32_v15 = vld [vmem:[%s1266_s1 + $0x38] sm:$0xff]  ;;  %v33_v16 = vld [vmem:[%s1266_s1 + $0x40] sm:$0xff]  ;;  %v34_v17 = vld [vmem:[%s1266_s1 + $0x48] sm:$0xff] }
   0x7   :  { %733 = vmatpush3.msra.mxu0 %v945_v2  ;;  %810 = vmatprep.subr.mxu1 %v945_v2  ;;  %v35_v18 = vld [vmem:[%s1266_s1 + $0x50] sm:$0xff]  ;;  %v36_v19 = vld [vmem:[%s1266_s1 + $0x58] sm:$0xff]  ;;  %v37_v20 = vld [vmem:[%s1266_s1 + $0x60] sm:$0xff] }
   0x8   :  { %734 = vmatprep.subr.mxu0 %v957_v4  ;;  %818 = vmatpush3.msra.mxu1 %v945_v2  ;;  %v38_v21 = vld [vmem:[%s1266_s1 + $0x68] sm:$0xff]  ;;  %v39_v22 = vld [vmem:[%s1266_s1 + $0x70] sm:$0xff]  ;;  %v40_v23 = vld [vmem:[%s1266_s1 + $0x78] sm:$0xff] }
   0x9   :  { %735 = vmatpush3.msra.mxu0 %v957_v4  ;;  %811 = vmatprep.subr.mxu1 %v957_v4  ;;  %v41_v24 = vld [vmem:[%s1266_s1 + $0x80] sm:$0xff]  ;;  %v42_v25 = vld [vmem:[%s1266_s1 + $0x88] sm:$0xff]  ;;  %v43_v26 = vld [vmem:[%s1266_s1 + $0x90] sm:$0xff] }
   0xa   :  { %736 = vmatprep.subr.mxu0 %v966_v5  ;;  %819 = vmatpush3.msra.mxu1 %v957_v4  ;;  %v44_v27 = vld [vmem:[%s1266_s1 + $0x98] sm:$0xff]  ;;  %v45_v28 = vld [vmem:[%s1266_s1 + $0xa0] sm:$0xff]  ;;  %v46_v29 = vld [vmem:[%s1266_s1 + $0xa8] sm:$0xff] }
   0xb   :  { %737 = vmatpush3.msra.mxu0 %v966_v5  ;;  %812 = vmatprep.subr.mxu1 %v966_v5  ;;  %v47_v30 = vld [vmem:[%s1266_s1 + $0xb0] sm:$0xff]  ;;  %v48_v31 = vld [vmem:[%s1266_s1 + $0xb8] sm:$0xff]  ;;  %v427_v32 = vld [vmem:[%s1267_s2] sm:$0xff] }
   0xc   :  { %738 = vmatprep.subr.mxu0 %v975_v6  ;;  %820 = vmatpush3.msra.mxu1 %v966_v5  ;;  %v62_v45 = vld [vmem:[%s1268_s3 + $0x68] sm:$0xff]  ;;  %v60_v46 = vld [vmem:[%s1268_s3 + $0x58] sm:$0xff]  ;;  %v61_v48 = vld [vmem:[%s1268_s3 + $0x60] sm:$0xff] }
   0xd   :  { %739 = vmatpush3.msra.mxu0 %v975_v6  ;;  %813 = vmatprep.subr.mxu1 %v975_v6  ;;  %v64_v51 = vld [vmem:[%s1268_s3 + $0x78] sm:$0xff]  ;;  %v59_v53 = vld [vmem:[%s1268_s3 + $0x50] sm:$0xff]  ;;  %v58_v58 = vld [vmem:[%s1268_s3 + $0x48] sm:$0xff] }
   0xe   :  { %740 = vmatprep.subr.mxu0 %v984_v7  ;;  %821 = vmatpush3.msra.mxu1 %v975_v6  ;;  %v63_v57 = vld [vmem:[%s1268_s3 + $0x70] sm:$0xff]  ;;  %v57_v63 = vld [vmem:[%s1268_s3 + $0x40] sm:$0xff] }
   0xf   :  { %741 = vmatpush3.msra.mxu0 %v984_v7  ;;  %814 = vmatprep.subr.mxu1 %v984_v7 }
  0x10   :  { %742 = vmatprep.subr.mxu0 %v993_v8  ;;  %822 = vmatpush3.msra.mxu1 %v984_v7 }
  0x11   :  { %743 = vmatpush3.msra.mxu0 %v993_v8  ;;  %815 = vmatprep.subr.mxu1 %v993_v8 }
  0x12   :  { %745 = vmatmul.mubr.msk.f32.vlgmr.msra.gmra.mxu0 %vm73_vm0, %v26_v9  ;;  %823 = vmatpush3.msra.mxu1 %v993_v8 }
  0x13   :  { %747 = vmatprep.mubr.msk.f32.mxu0 %vm73_vm0, %v27_v10  ;;  %768 = vmatprep.mubr.msk.f32.mxu1 %vm73_vm0, %v41_v24 }
  0x14   :  { %769 = vmatmul.mubr.msk.f32.vlgmr.msra.gmra.mxu1 %vm73_vm0, %v42_v25 }
  0x15   :  { %771 = vmatprep.mubr.msk.f32.mxu1 %vm73_vm0, %v43_v26 }
  0x16   :  { %748 = vmatmul.mubr.msk.f32.gmra.mxu0 %vm73_vm0, %v28_v11 }
  0x17   :  { %750 = vmatprep.mubr.msk.f32.mxu0 %vm73_vm0, %v29_v12 }
  0x18   :  { %772 = vmatmul.mubr.msk.f32.gmra.mxu1 %vm73_vm0, %v44_v27 }
  0x19   :  { %774 = vmatprep.mubr.msk.f32.mxu1 %vm73_vm0, %v45_v28 }
  0x1a   :  { %751 = vmatmul.mubr.msk.f32.gmra.mxu0 %vm73_vm0, %v30_v13 }
  0x1b   :  { %753 = vmatprep.mubr.msk.f32.mxu0 %vm73_vm0, %v31_v14 }
  0x1c   :  { %775 = vmatmul.mubr.msk.f32.gmra.mxu1 %vm73_vm0, %v46_v29 }
  0x1d   :  { %777 = vmatprep.mubr.msk.f32.mxu1 %vm73_vm0, %v47_v30 }
  0x1e   :  { %754 = vmatmul.mubr.msk.f32.gmra.mxu0 %vm73_vm0, %v32_v15 }
  0x1f   :  { %756 = vmatprep.mubr.msk.f32.mxu0 %vm73_vm0, %v33_v16 }
  0x20   :  { %778 = vmatmul.mubr.msk.f32.gmra.mxu1 %vm73_vm0, %v48_v31 }
  0x21   :  { %796 = vmatprep.mubr.msk.f32.mxu1 %vm73_vm0, %v427_v32 }
  0x22   :  { %757 = vmatmul.mubr.msk.f32.gmra.mxu0 %vm73_vm0, %v34_v17 }
  0x23   :  { %759 = vmatprep.mubr.msk.f32.mxu0 %vm73_vm0, %v35_v18 }
  0x26   :  { %760 = vmatmul.mubr.msk.f32.gmra.mxu0 %vm73_vm0, %v36_v19 }
  0x27   :  { %762 = vmatprep.mubr.msk.f32.mxu0 %vm73_vm0, %v37_v20 }
  0x2a   :  { %763 = vmatmul.mubr.msk.f32.gmra.mxu0 %vm73_vm0, %v38_v21 }
  0x2b   :  { %765 = vmatprep.mubr.msk.f32.mxu0 %vm73_vm0, %v39_v22 }
  0x2e   :  { %766 = vmatmul.mubr.msk.f32.gmra.mxu0 %vm73_vm0, %v40_v23 }
  0xd2   :  { %v1101_v33 = vpop.f32.mrf.mxu0 }
  0xd4   :  { %v1103_v34 = vpop.f32.mrf.mxu0 }
  0xd6   :  { %v1105_v35 = vpop.f32.mrf.mxu0 }
  0xd8   :  { %v1107_v36 = vpop.f32.mrf.mxu0 }
  0xda   :  { %v1109_v37 = vpop.f32.mrf.mxu0 }
  0xdc   :  { %v1111_v38 = vpop.f32.mrf.mxu0 }
  0xde   :  { %v1113_v39 = vpop.f32.mrf.mxu0 }
  0xe0   :  { %v1115_v40 = vpop.f32.mrf.mxu0 }
  0xe2   :  { %v758_v41 = vpop.f32.mrf.mxu0 }
  0xe3   :  { %v258_v11 = vadd.f32 %v758_v41, %v58_v58  ;;  %v429_v58 = vld [vmem:[%s1267_s2 + $0x10] sm:$0xff] }
  0xe4   :  { %v252_v42 = vpop.f32.mrf.mxu0 }
  0xe5   :  { %v253_v13 = vadd.f32 %v252_v42, %v57_v63  ;;  %v665_v15 = vmul.f32 -1.442695, %v258_v11  ;;  %v434_v63 = vld [vmem:[%s1267_s2 + $0x38] sm:$0xff] }
  0xe6   :  { %v761_v43 = vpop.f32.mrf.mxu0  ;;  %v52_v11 = vld [vmem:[%s1268_s3 + $0x18] sm:$0xff] }
  0xe7   :  { %v268_v52 = vadd.f32 %v761_v43, %v60_v46  ;;  %v664_v16 = vmul.f32 -1.442695, %v253_v13 }
  0xe8   :  { %v262_v44 = vpop.f32.mrf.mxu0 }
  0xe9   :  { %v263_v61 = vadd.f32 %v262_v44, %v59_v53  ;;  %v667_v3 = vmul.f32 -1.442695, %v268_v52 }
  0xea   :  { %v764_v47 = vpop.f32.mrf.mxu0 }
  0xeb   :  { %v278_v49 = vadd.f32 %v764_v47, %v62_v45  ;;  %v666_v14 = vmul.f32 -1.442695, %v263_v61  ;;  %v432_v61 = vld [vmem:[%s1267_s2 + $0x28] sm:$0xff] }
  0xec   :  { %v272_v50 = vpop.f32.mrf.mxu0 }
  0xed   :  { %v669_v54 = vmul.f32 -1.442695, %v278_v49  ;;  %v273_v55 = vadd.f32 %v272_v50, %v61_v48 }
  0xee   :  { %v767_v56 = vpop.f32.mrf.mxu0 }
  0xef   :  { %v668_v59 = vmul.f32 -1.442695, %v273_v55  ;;  %v288_v60 = vadd.f32 %v767_v56, %v64_v51  ;;  %824 = vpow2.f32 %v669_v54 }
  0xf0   :  { %v282_v62 = vpop.f32.mrf.mxu0 }
  0xf1   :  { %v671_v9 = vmul.f32 -1.442695, %v288_v60  ;;  %v283_v10 = vadd.f32 %v282_v62, %v63_v57  ;;  %826 = vpow2.f32 %v668_v59  ;;  %v428_v57 = vld [vmem:[%s1267_s2 + $0x8] sm:$0xff]  ;;  %v430_v59 = vld [vmem:[%s1267_s2 + $0x18] sm:$0xff]  ;;  %v431_v60 = vld [vmem:[%s1267_s2 + $0x20] sm:$0xff] }
  0xf2   :  { %v433_v62 = vld [vmem:[%s1267_s2 + $0x30] sm:$0xff] }
  0xf3   :  { %v670_v12 = vmul.f32 -1.442695, %v283_v10  ;;  %828 = vpow2.f32 %v671_v9  ;;  %v49_v9 = vld [vmem:[%s1268_s3] sm:$0xff] }
  0xf4   :  { %830 = vpow2.f32 %v667_v3  ;;  %v50_v3 = vld [vmem:[%s1268_s3 + $0x8] sm:$0xff]  ;;  %v213_v13 = vadd.f32 %v1103_v34, %v49_v9 }
  0xf5   :  { %832 = vpow2.f32 %v670_v12  ;;  %v218_v10 = vadd.f32 %v1101_v33, %v50_v3  ;;  %v770_v12 = vpop.f32.mrf.mxu1 }
  0xf6   :  { %834 = vpow2.f32 %v666_v14  ;;  %v51_v14 = vld [vmem:[%s1268_s3 + $0x10] sm:$0xff] }
  0xf7   :  { %836 = vpow2.f32 %v665_v15  ;;  %v657_v15 = vmul.f32 -1.442695, %v218_v10  ;;  %v223_v33 = vadd.f32 %v1107_v36, %v51_v14  ;;  %v55_v36 = vld [vmem:[%s1268_s3 + $0x30] sm:$0xff]  ;;  %v70_v10 = vld [vmem:[%s1268_s3 + $0xa8] sm:$0xff] }
  0xf8   :  { %838 = vpow2.f32 %v664_v16  ;;  %v228_v16 = vadd.f32 %v1105_v35, %v52_v11  ;;  %v56_v35 = vld [vmem:[%s1268_s3 + $0x38] sm:$0xff] }
  0xfc   :  { %v825_v17 = vpop.eup %824 }
  0xfd   :  { %v408_v20 = vadd.f32 1.0, %v825_v17  ;;  %v54_v17 = vld [vmem:[%s1268_s3 + $0x28] sm:$0xff] }
  0xfe   :  { %v827_v18 = vpop.eup %826  ;;  %v238_v34 = vadd.f32 %v1109_v37, %v54_v17 }
  0xff   :  { %v407_v24 = vadd.f32 1.0, %v827_v18  ;;  %v292_v18 = vpop.f32.mrf.mxu1 }
 0x100   :  { %v829_v19 = vpop.eup %828 }
 0x101   :  { %v831_v21 = vpop.eup %830  ;;  %v410_v22 = vadd.f32 1.0, %v829_v19  ;;  %v656_v19 = vmul.f32 -1.442695, %v213_v13 }
 0x102   :  { %v833_v23 = vpop.eup %832  ;;  %v406_v27 = vadd.f32 1.0, %v831_v21  ;;  %v659_v21 = vmul.f32 -1.442695, %v228_v16 }
 0x103   :  { %840 = vrcp.f32 %v410_v22  ;;  %v409_v25 = vadd.f32 1.0, %v833_v23  ;;  %v835_v26 = vpop.eup %834  ;;  %v658_v22 = vmul.f32 -1.442695, %v223_v33 }
 0x104   :  { %842 = vrcp.f32 %v408_v20  ;;  %v837_v28 = vpop.eup %836  ;;  %v405_v29 = vadd.f32 1.0, %v835_v26  ;;  %v53_v20 = vld [vmem:[%s1268_s3 + $0x20] sm:$0xff]  ;;  %v248_v26 = vadd.f32 %v1113_v39, %v56_v35  ;;  %v71_v35 = vld [vmem:[%s1268_s3 + $0xb0] sm:$0xff] }
 0x105   :  { %844 = vrcp.f32 %v409_v25  ;;  %v839_v30 = vpop.eup %838  ;;  %v404_v31 = vadd.f32 1.0, %v837_v28  ;;  %v233_v23 = vadd.f32 %v1111_v38, %v53_v20  ;;  %v661_v25 = vmul.f32 -1.442695, %v238_v34 }
 0x106   :  { %846 = vrcp.f32 %v407_v24  ;;  %v403_v32 = vadd.f32 1.0, %v839_v30  ;;  %v773_v24 = vpop.f32.mrf.mxu1 }
 0x107   :  { %848 = vrcp.f32 %v406_v27  ;;  %v660_v37 = vmul.f32 -1.442695, %v233_v23  ;;  %v243_v27 = vadd.f32 %v1115_v40, %v55_v36  ;;  %v66_v40 = vld [vmem:[%s1268_s3 + $0x88] sm:$0xff] }
 0x108   :  { %850 = vrcp.f32 %v405_v29  ;;  %v302_v28 = vpop.f32.mrf.mxu1  ;;  %v663_v29 = vmul.f32 -1.442695, %v248_v26 }
 0x109   :  { %852 = vrcp.f32 %v404_v31  ;;  %v662_v30 = vmul.f32 -1.442695, %v243_v27 }
 0x10a   :  { %854 = vrcp.f32 %v403_v32  ;;  %v776_v38 = vpop.f32.mrf.mxu1 }
 0x10b   :  { %856 = vpow2.f32 %v657_v15  ;;  %v69_v15 = vld [vmem:[%s1268_s3 + $0xa0] sm:$0xff]  ;;  %v318_v17 = vadd.f32 %v776_v38, %v70_v10 }
 0x10c   :  { %858 = vpow2.f32 %v656_v19  ;;  %v312_v32 = vpop.f32.mrf.mxu1 }
 0x10d   :  { %860 = vpow2.f32 %v659_v21  ;;  %v313_v20 = vadd.f32 %v312_v32, %v69_v15 }
 0x10e   :  { %862 = vpow2.f32 %v658_v22 }
 0x10f   :  { %864 = vpow2.f32 %v661_v25 }
 0x110   :  { %v841_v41 = vpop.eup %840  ;;  %866 = vpow2.f32 %v660_v37 }
 0x111   :  { %v843_v42 = vpop.eup %842  ;;  %v442_v43 = vmul.f32 %v841_v41, %v932_v0  ;;  %868 = vpow2.f32 %v663_v29 }
 0x112   :  { %v845_v44 = vpop.eup %844  ;;  %v440_v47 = vmul.f32 %v843_v42, %v945_v2  ;;  %870 = vpow2.f32 %v662_v30 }
 0x113   :  { %780 = vmatprep.subr.mxu1 %v442_v43  ;;  %v441_v45 = vmul.f32 %v845_v44, %v937_v1  ;;  %v847_v46 = vpop.eup %846  ;;  %v779_v44 = vpop.f32.mrf.mxu1 }
 0x114   :  { %781 = vmatpush3.msra.mxu1 %v442_v43  ;;  %v849_v48 = vpop.eup %848  ;;  %v439_v49 = vmul.f32 %v847_v46, %v957_v4 }
 0x115   :  { %782 = vmatprep.subr.mxu1 %v441_v45  ;;  %v851_v50 = vpop.eup %850  ;;  %v438_v51 = vmul.f32 %v849_v48, %v966_v5 }
 0x116   :  { %783 = vmatpush3.msra.mxu1 %v441_v45  ;;  %v853_v52 = vpop.eup %852  ;;  %v437_v53 = vmul.f32 %v851_v50, %v975_v6  ;;  %v322_v50 = vpop.f32.mrf.mxu1 }
 0x117   :  { %784 = vmatprep.subr.mxu1 %v440_v47  ;;  %v855_v54 = vpop.eup %854  ;;  %v436_v55 = vmul.f32 %v853_v52, %v984_v7  ;;  %v298_v52 = vadd.f32 %v770_v12, %v66_v40  ;;  %v323_v37 = vadd.f32 %v322_v50, %v71_v35 }
 0x118   :  { %785 = vmatpush3.msra.mxu1 %v440_v47  ;;  %v435_v56 = vmul.f32 %v855_v54, %v993_v8  ;;  %v857_v31 = vpop.eup %856  ;;  %v68_v54 = vld [vmem:[%s1268_s3 + $0x98] sm:$0xff] }
 0x119   :  { %786 = vmatprep.subr.mxu1 %v439_v49  ;;  %v859_v41 = vpop.eup %858  ;;  %v356_v42 = vadd.f32 1.0, %v857_v31 }
 0x11a   :  { %787 = vmatpush3.msra.mxu1 %v439_v49  ;;  %v861_v43 = vpop.eup %860  ;;  %v355_v45 = vadd.f32 1.0, %v859_v41  ;;  %v65_v49 = vld [vmem:[%s1268_s3 + $0x80] sm:$0xff] }
 0x11b   :  { %788 = vmatprep.subr.mxu1 %v438_v51  ;;  %v863_v39 = vpop.eup %862  ;;  %872 = vrcp.f32 %v356_v42  ;;  %v358_v47 = vadd.f32 1.0, %v861_v43 }
 0x11c   :  { %789 = vmatpush3.msra.mxu1 %v438_v51  ;;  %v865_v46 = vpop.eup %864  ;;  %v357_v48 = vadd.f32 1.0, %v863_v39  ;;  %874 = vrcp.f32 %v355_v45 }
 0x11d   :  { %790 = vmatprep.subr.mxu1 %v437_v53  ;;  %v867_v51 = vpop.eup %866  ;;  %876 = vrcp.f32 %v358_v47 }
 0x11e   :  { %791 = vmatpush3.msra.mxu1 %v437_v53  ;;  %v360_v53 = vadd.f32 1.0, %v865_v46  ;;  %878 = vrcp.f32 %v357_v48 }
 0x11f   :  { %792 = vmatprep.subr.mxu1 %v436_v55 }
 0x120   :  { %793 = vmatpush3.msra.mxu1 %v436_v55 }
 0x121   :  { %794 = vmatprep.subr.mxu1 %v435_v56 }
 0x122   :  { %795 = vmatpush3.msra.mxu1 %v435_v56  ;;  %v869_v56 = vpop.eup %868 }
 0x123   :  { %797 = vmatmul.mubr.msk.f32.vlgmr.msra.gmra.mxu1 %vm73_vm0, %v428_v57  ;;  %v293_v57 = vadd.f32 %v292_v18, %v65_v49  ;;  %v362_v9 = vadd.f32 1.0, %v869_v56  ;;  %v72_v18 = vld [vmem:[%s1268_s3 + $0xb8] sm:$0xff] }
 0x124   :  { %799 = vmatprep.mubr.msk.f32.mxu1 %vm73_vm0, %v429_v58  ;;  %v328_v23 = vadd.f32 %v779_v44, %v72_v18 }
 0x127   :  { %800 = vmatmul.mubr.msk.f32.gmra.mxu1 %vm73_vm0, %v430_v59  ;;  %v359_v59 = vadd.f32 1.0, %v867_v51 }
 0x128   :  { %802 = vmatprep.mubr.msk.f32.mxu1 %vm73_vm0, %v431_v60  ;;  %v67_v60 = vld [vmem:[%s1268_s3 + $0x90] sm:$0xff] }
 0x129   :  { %v303_v12 = vadd.f32 %v302_v28, %v67_v60 }
 0x12b   :  { %803 = vmatmul.mubr.msk.f32.gmra.mxu1 %vm73_vm0, %v432_v61 }
 0x12c   :  { %805 = vmatprep.mubr.msk.f32.mxu1 %vm73_vm0, %v433_v62  ;;  %v871_v62 = vpop.eup %870 }
 0x12d   :  { %v361_v14 = vadd.f32 1.0, %v871_v62  ;;  %v873_v21 = vpop.eup %872 }
 0x12e   :  { %v875_v36 = vpop.eup %874  ;;  %v589_v26 = vsub.f32 1.0, %v873_v21 }
 0x12f   :  { %806 = vmatmul.mubr.msk.f32.gmra.mxu1 %vm73_vm0, %v434_v63  ;;  %v308_v63 = vadd.f32 %v773_v24, %v68_v54  ;;  %v877_v28 = vpop.eup %876  ;;  %v588_v38 = vsub.f32 1.0, %v875_v36 }
 0x130   :  { %v879_v30 = vpop.eup %878  ;;  %v591_v42 = vsub.f32 1.0, %v877_v28  ;;  %v597_v43 = vmul.f32 %v589_v26, %v984_v7 }
 0x131   :  { %v590_v40 = vsub.f32 1.0, %v879_v30  ;;  %v596_v47 = vmul.f32 %v588_v38, %v993_v8 }
 0x1e3   :  { %v798_v55 = vpop.f32.mrf.mxu1 }
 0x1e4   :  { %v573_v58 = vadd.f32 %v798_v55, %v298_v52 }
 0x1e5   :  { %v533_v61 = vpop.f32.mrf.mxu1 }
 0x1e6   :  { %880 = vtanh.f32 %v573_v58  ;;  %v572_v3 = vadd.f32 %v533_v61, %v293_v57  ;;  %v598_v57 = vmul.f32 %v590_v40, %v975_v6 }
 0x1e7   :  { %882 = vrcp.f32 %v360_v53  ;;  %v801_v11 = vpop.f32.mrf.mxu1  ;;  %v599_v53 = vmul.f32 %v591_v42, %v966_v5 }
 0x1e8   :  { %884 = vtanh.f32 %v572_v3  ;;  %v575_v13 = vadd.f32 %v801_v11, %v308_v63 }
 0x1e9   :  { %886 = vrcp.f32 %v359_v59  ;;  %v543_v16 = vpop.f32.mrf.mxu1 }
 0x1ea   :  { %888 = vtanh.f32 %v575_v13  ;;  %v574_v33 = vadd.f32 %v543_v16, %v303_v12 }
 0x1eb   :  { %890 = vrcp.f32 %v362_v9  ;;  %v804_v19 = vpop.f32.mrf.mxu1 }
 0x1ec   :  { %892 = vtanh.f32 %v574_v33  ;;  %v577_v34 = vadd.f32 %v804_v19, %v318_v17 }
 0x1ed   :  { %894 = vrcp.f32 %v361_v14  ;;  %v553_v22 = vpop.f32.mrf.mxu1 }
 0x1ee   :  { %896 = vtanh.f32 %v577_v34  ;;  %v576_v24 = vadd.f32 %v553_v22, %v313_v20 }
 0x1ef   :  { %v807_v25 = vpop.f32.mrf.mxu1 }
 0x1f0   :  { %898 = vtanh.f32 %v576_v24  ;;  %v579_v27 = vadd.f32 %v807_v25, %v328_v23 }
 0x1f1   :  { %v563_v29 = vpop.f32.mrf.mxu1 }
 0x1f2   :  { %900 = vtanh.f32 %v579_v27  ;;  %v578_v31 = vadd.f32 %v563_v29, %v323_v37 }
 0x1f3   :  { %v881_v32 = vpop.eup %880 }
 0x1f4   :  { %v883_v41 = vpop.eup %882  ;;  %v605_v44 = vmul.f32 %v881_v32, %v873_v21  ;;  %902 = vtanh.f32 %v578_v31 }
 0x1f5   :  { %v885_v39 = vpop.eup %884  ;;  %v593_v51 = vsub.f32 1.0, %v883_v41 }
 0x1f6   :  { %v887_v45 = vpop.eup %886  ;;  %v613_v46 = vadd.f32 %v605_v44, %v597_v43  ;;  %v604_v48 = vmul.f32 %v885_v39, %v875_v36 }
 0x1f7   :  { %v889_v49 = vpop.eup %888  ;;  %v592_v56 = vsub.f32 1.0, %v887_v45  ;;  %v601_v5 = vmul.f32 %v593_v51, %v945_v2 }
 0x1f8   :  { %v891_v50 = vpop.eup %890  ;;  %621 = vst [vmem:[%s1269_s4 + $0x8] sm:$0xff] %v613_v46  ;;  %v612_v52 = vadd.f32 %v604_v48, %v596_v47  ;;  %v607_v7 = vmul.f32 %v889_v49, %v877_v28 }
 0x1f9   :  { %v893_v54 = vpop.eup %892  ;;  %v595_v60 = vsub.f32 1.0, %v891_v50  ;;  %v600_v6 = vmul.f32 %v592_v56, %v957_v4 }
 0x1fa   :  { %v895_v55 = vpop.eup %894  ;;  %620 = vst [vmem:[%s1269_s4] sm:$0xff] %v612_v52  ;;  %v615_v8 = vadd.f32 %v607_v7, %v599_v53  ;;  %v606_v58 = vmul.f32 %v893_v54, %v879_v30 }
 0x1fb   :  { %v897_v59 = vpop.eup %896  ;;  %v594_v3 = vsub.f32 1.0, %v895_v55  ;;  %v603_v13 = vmul.f32 %v595_v60, %v932_v0 }
 0x1fc   :  { %623 = vst [vmem:[%s1269_s4 + $0x18] sm:$0xff] %v615_v8  ;;  %v614_v61 = vadd.f32 %v606_v58, %v598_v57  ;;  %v609_v62 = vmul.f32 %v897_v59, %v883_v41 }
 0x1fd   :  { %v899_v63 = vpop.eup %898  ;;  %v602_v16 = vmul.f32 %v594_v3, %v937_v1 }
 0x1fe   :  { %622 = vst [vmem:[%s1269_s4 + $0x10] sm:$0xff] %v614_v61  ;;  %v617_v9 = vadd.f32 %v609_v62, %v601_v5  ;;  %v608_v10 = vmul.f32 %v899_v63, %v887_v45 }
 0x1ff   :  { %v901_v11 = vpop.eup %900 }
 0x200   :  { %625 = vst [vmem:[%s1269_s4 + $0x28] sm:$0xff] %v617_v9  ;;  %v616_v12 = vadd.f32 %v608_v10, %v600_v6  ;;  %v611_v2 = vmul.f32 %v901_v11, %v891_v50 }
 0x201   :  { %v903_v14 = vpop.eup %902 }
 0x202   :  { %624 = vst [vmem:[%s1269_s4 + $0x20] sm:$0xff] %v616_v12  ;;  %v619_v15 = vadd.f32 %v611_v2, %v603_v13  ;;  %v610_v17 = vmul.f32 %v903_v14, %v895_v55 }
 0x204   :  { %627 = vst [vmem:[%s1269_s4 + $0x38] sm:$0xff] %v619_v15  ;;  %v618_v4 = vadd.f32 %v610_v17, %v602_v16 }
 0x206   :  { %626 = vst [vmem:[%s1269_s4 + $0x30] sm:$0xff] %v618_v4 }

</bundles_post_ra>
